<compile_context>
chip_gen: v7x
topology: tpu7x:2x2x1
jax: 0.10.0
libtpu: 0.0.40
codegen_flags: <defaults>
</compile_context>

<pallas_src>
import functools

import jax
import jax.numpy as jnp
from jax import lax
from jax.experimental import pallas as pl
from jax.experimental.pallas import tpu as pltpu

# Module hyperparameters (PyTorch __init__ defaults)
NUM_POS = 256
NUM_BLOCKS = 6
NUM_HEADS = 12
EMB_POS_DIM = 32
EMB_BLOCKS_DIM = 4
EMB_HEADS_DIM = 8
X_DIM = 64
CAT_DIM = X_DIM + EMB_POS_DIM + EMB_BLOCKS_DIM + EMB_HEADS_DIM  # 108
H1_DIM = 64
H2_DIM = 128
OUT_DIM = 64

# Kernel-side padded dims (zero padding -> numerically exact)
H1_PAD = 128                       # fc1 output padded to a full lane width
BLK_PAD = 8                        # one-hot(b) lanes
HD_PAD = 16                        # one-hot(h) lanes
AUG_K = 384                        # merged fc1 contraction dim (64+256+8+16+40)
ONEHOT_LANES = AUG_K - X_DIM       # 320
ROW_POS = X_DIM                    # row offsets inside the merged fc1 weight
ROW_BLK = ROW_POS + NUM_POS        # 320
ROW_HD = ROW_BLK + BLK_PAD         # 328

DEFAULT_TILE_N = 2048              # rows per grid step
VMEM_LIMIT_BYTES = 48 * 1024 * 1024


def _round_up(a, m):
    return (a + m - 1) // m * m


def _choose_tile(n, tile_n):
    if n >= 16:
        # >=2 blocks so the "parallel" grid can shard across v7x's two TCs.
        return min(tile_n, _round_up(pl.cdiv(n, 2), 8))
    return _round_up(max(n, 1), 8)


def _mlp_kernel(x_ref, idx_ref, w1_ref, b1_ref, w2_ref, b2_ref, w3_ref, b3_ref,
                o_ref):
    """Fused one-hot embedding gather + fc1 + relu + fc2 + relu + fc3 + residual."""
    x = x_ref[...]                                   # [TN, 64] f32 (exact residual)
    packed = idx_ref[...]                            # [TN, 1] int32: p | b<<8 | h<<12
    tn = x.shape[0]

    p = packed & 0xFF
    b = (packed >> 8) & 0xF
    h = (packed >> 12) & 0xF

    # One-hot lanes for [p(256) | b(8) | h(16) | zero-pad(40)], built from a
    # single iota and compared directly into the matmul dtype (bf16).
    lanes = lax.broadcasted_iota(jnp.int32, (tn, ONEHOT_LANES), 1)
    onehot = ((lanes == p)
              | (lanes == b + NUM_POS)
              | (lanes == h + (NUM_POS + BLK_PAD))).astype(jnp.bfloat16)

    # Merged fc1: a single K=384 bf16 matmul against the concatenated weight.
    aug = jnp.concatenate([x.astype(jnp.bfloat16), onehot], axis=1)   # [TN, 384]
    h1 = jnp.dot(aug, w1_ref[...], preferred_element_type=jnp.float32)
    h1 = jnp.maximum(h1 + b1_ref[...], 0.0)          # [TN, 128] (cols 64: are 0)

    h2 = jnp.dot(h1.astype(jnp.bfloat16), w2_ref[...],
                 preferred_element_type=jnp.float32)
    h2 = jnp.maximum(h2 + b2_ref[...], 0.0)          # [TN, 128]

    h3 = jnp.dot(h2.astype(jnp.bfloat16), w3_ref[...],
                 preferred_element_type=jnp.float32)
    o_ref[...] = h3 + b3_ref[...] + x                # residual add in f32


def value_network_forward(params, x, p, b, h, *, tile_n=DEFAULT_TILE_N):
    """Forward pass matching ValueNetworkDistilGPT2.forward semantics."""
    n = x.shape[0]
    hp = lax.Precision.HIGHEST

    # ---- fold embedding tables through their fc1 slices (tiny, HIGHEST) ----
    w1 = params["w1"]                                              # [108, 64]
    o_p = X_DIM
    o_b = o_p + EMB_POS_DIM
    o_h = o_b + EMB_BLOCKS_DIM
    t_pos = jnp.dot(params["emb_pos"], w1[o_p:o_b], precision=hp)     # [256, 64]
    t_blk = jnp.dot(params["emb_blocks"], w1[o_b:o_h], precision=hp)  # [6, 64]
    t_hd = jnp.dot(params["emb_heads"], w1[o_h:], precision=hp)       # [12, 64]

    # ---- merged fc1 weight [384, 128]: [w1_x ; t_pos ; t_blk ; t_hd ; 0] ----
    w1_cat = jnp.zeros((AUG_K, H1_PAD), jnp.float32)
    w1_cat = w1_cat.at[:X_DIM, :H1_DIM].set(w1[:o_p])
    w1_cat = w1_cat.at[ROW_POS:ROW_POS + NUM_POS, :H1_DIM].set(t_pos)
    w1_cat = w1_cat.at[ROW_BLK:ROW_BLK + NUM_BLOCKS, :H1_DIM].set(t_blk)
    w1_cat = w1_cat.at[ROW_HD:ROW_HD + NUM_HEADS, :H1_DIM].set(t_hd)
    w1_cat = w1_cat.astype(jnp.bfloat16)

    b1 = jnp.pad(params["b1"], ((0, 0), (0, H1_PAD - H1_DIM)))         # f32
    w2 = jnp.pad(params["w2"], ((0, H1_PAD - H1_DIM), (0, 0))).astype(jnp.bfloat16)
    b2 = params["b2"]                                                  # f32
    w3 = params["w3"].astype(jnp.bfloat16)
    b3 = params["b3"]                                                  # f32

    # ---- pack (p, b, h) into one int32 per row: one dense [N, 1] stream ----
    idx = (p.astype(jnp.int32)
           | (b.astype(jnp.int32) << 8)
           | (h.astype(jnp.int32) << 12))[:, None]

    # ---- batch tiling; no wrapper-side padding (Pallas masks the tail) ----
    tile = _choose_tile(n, tile_n)
    grid = (pl.cdiv(n, tile),)

    row_spec = lambda w: pl.BlockSpec((tile, w), lambda i: (i, 0))
    const_spec = lambda shp: pl.BlockSpec(shp, lambda i: (0, 0))

    flops = 2 * n * (AUG_K * H1_PAD + H1_PAD * H2_DIM + H2_DIM * OUT_DIM)
    weight_bytes = (2 * (AUG_K * H1_PAD + H1_PAD * H2_DIM + H2_DIM * OUT_DIM)
                    + 4 * (H1_PAD + H2_DIM + OUT_DIM))
    bytes_accessed = n * 4 * (X_DIM + 1 + OUT_DIM) + weight_bytes

    out = pl.pallas_call(
        _mlp_kernel,
        out_shape=jax.ShapeDtypeStruct((n, OUT_DIM), jnp.float32),
        grid=grid,
        in_specs=[
            row_spec(X_DIM),                  # x tile (f32; fc1 operand + residual)
            row_spec(1),                      # packed (p,b,h) tile
            const_spec((AUG_K, H1_PAD)),      # merged fc1 weight (bf16)
            const_spec((1, H1_PAD)),          # b1
            const_spec((H1_PAD, H2_DIM)),     # w2 (bf16)
            const_spec((1, H2_DIM)),          # b2
            const_spec((H2_DIM, OUT_DIM)),    # w3 (bf16)
            const_spec((1, OUT_DIM)),         # b3
        ],
        out_specs=row_spec(OUT_DIM),
        compiler_params=pltpu.CompilerParams(
            dimension_semantics=("parallel",),
            vmem_limit_bytes=VMEM_LIMIT_BYTES),
        cost_estimate=pl.CostEstimate(
            flops=flops, transcendentals=0, bytes_accessed=bytes_accessed),
    )(x, idx, w1_cat, b1, w2, b2, w3, b3)

    return out


def init_params(key):
    """Deterministic parameter init (PyTorch-style uniform ranges)."""
    ks = jax.random.split(key, 9)

    def linear(kw, kb, fan_in, fan_out):
        bound = 1.0 / jnp.sqrt(fan_in)
        # stored already transposed to [in, out] so forward does z @ W
        w = jax.random.uniform(kw, (fan_in, fan_out), jnp.float32, -bound, bound)
        bb = jax.random.uniform(kb, (1, fan_out), jnp.float32, -bound, bound)
        return w, bb

    w1, b1 = linear(ks[0], ks[1], CAT_DIM, H1_DIM)
    w2, b2 = linear(ks[2], ks[3], H1_DIM, H2_DIM)
    w3, b3 = linear(ks[4], ks[5], H2_DIM, OUT_DIM)

    return {
        "emb_pos": jax.random.normal(ks[6], (NUM_POS, EMB_POS_DIM), jnp.float32),
        "emb_blocks": jax.random.normal(ks[7], (NUM_BLOCKS, EMB_BLOCKS_DIM), jnp.float32),
        "emb_heads": jax.random.normal(ks[8], (NUM_HEADS, EMB_HEADS_DIM), jnp.float32),
        "w1": w1, "b1": b1,
        "w2": w2, "b2": b2,
        "w3": w3, "b3": b3,
    }


def _reference_forward(params, x, p, b, h):
    """Pure-JAX reference mirroring the PyTorch module."""
    p_emb = jnp.take(params["emb_pos"], p, axis=0)
    b_emb = jnp.take(params["emb_blocks"], b, axis=0)
    h_emb = jnp.take(params["emb_heads"], h, axis=0)
    x_z = jnp.concatenate([x, p_emb, b_emb, h_emb], axis=1)
    x_z = jax.nn.relu(x_z @ params["w1"] + params["b1"])
    x_z = jax.nn.relu(x_z @ params["w2"] + params["b2"])
    return x_z @ params["w3"] + params["b3"] + x


if __name__ == "__main__":
    key = jax.random.PRNGKey(0)
    k_param, k_x, k_p, k_b, k_h = jax.random.split(key, 5)
    params = init_params(k_param)

    # --- small batch: single grid block ---
    N = 8
    x = jax.random.normal(k_x, (N, X_DIM), jnp.float32)
    p = jax.random.randint(k_p, (N,), 0, NUM_POS, jnp.int32)
    b = jax.random.randint(k_b, (N,), 0, NUM_BLOCKS, jnp.int32)
    h = jax.random.randint(k_h, (N,), 0, NUM_HEADS, jnp.int32)

    out = jax.block_until_ready(jax.jit(value_network_forward)(params, x, p, b, h))
    ref = _reference_forward(params, x, p, b, h)
    assert out.shape == (N, OUT_DIM)
    assert jnp.allclose(out, ref, atol=5e-2, rtol=5e-2), float(
        jnp.max(jnp.abs(out - ref)))

    # --- multi-tile path: batch grid + masked partial last block (no padding) ---
    N2 = 200
    x2 = jax.random.normal(k_x, (N2, X_DIM), jnp.float32)
    p2 = jax.random.randint(k_p, (N2,), 0, NUM_POS, jnp.int32)
    b2 = jax.random.randint(k_b, (N2,), 0, NUM_BLOCKS, jnp.int32)
    h2 = jax.random.randint(k_h, (N2,), 0, NUM_HEADS, jnp.int32)

    fwd_tiled = jax.jit(functools.partial(value_network_forward, tile_n=64))
    out2 = jax.block_until_ready(fwd_tiled(params, x2, p2, b2, h2))
    ref2 = _reference_forward(params, x2, p2, b2, h2)
    assert out2.shape == (N2, OUT_DIM)
    assert jnp.allclose(out2, ref2, atol=5e-2, rtol=5e-2), float(
        jnp.max(jnp.abs(out2 - ref2)))

    print("KERNEL_OK")
</pallas_src>

<mosaic_0001>
module attributes {stable_mosaic.version = 11 : i64} {
  func.func @_mlp_kernel(%arg0: i32, %arg1: memref<8x64xf32, #tpu.memory_space<vmem>>, %arg2: memref<8x1xi32, #tpu.memory_space<vmem>>, %arg3: memref<384x128xbf16, #tpu.memory_space<vmem>>, %arg4: memref<1x128xf32, #tpu.memory_space<vmem>>, %arg5: memref<128x128xbf16, #tpu.memory_space<vmem>>, %arg6: memref<1x128xf32, #tpu.memory_space<vmem>>, %arg7: memref<128x64xbf16, #tpu.memory_space<vmem>>, %arg8: memref<1x64xf32, #tpu.memory_space<vmem>>, %arg9: memref<8x64xf32, #tpu.memory_space<vmem>>) attributes {dimension_semantics = [#tpu.dimension_semantics<parallel>], iteration_bounds = array<i64: 1>, scalar_prefetch = 0 : i64, scratch_operands = 0 : i64, tpu.core_type = #tpu.core_type<tc>, window_params = [{transform_indices = @transform_0, window_bounds = array<i64: 8, 64>}, {transform_indices = @transform_1, window_bounds = array<i64: 8, 1>}, {pipeline_mode = #tpu.pipeline_mode<synchronous>, transform_indices = @transform_2, window_bounds = array<i64: 384, 128>}, {pipeline_mode = #tpu.pipeline_mode<synchronous>, transform_indices = @transform_3, window_bounds = array<i64: 1, 128>}, {pipeline_mode = #tpu.pipeline_mode<synchronous>, transform_indices = @transform_4, window_bounds = array<i64: 128, 128>}, {pipeline_mode = #tpu.pipeline_mode<synchronous>, transform_indices = @transform_5, window_bounds = array<i64: 1, 128>}, {pipeline_mode = #tpu.pipeline_mode<synchronous>, transform_indices = @transform_6, window_bounds = array<i64: 128, 64>}, {pipeline_mode = #tpu.pipeline_mode<synchronous>, transform_indices = @transform_7, window_bounds = array<i64: 1, 64>}, {transform_indices = @transform_8, window_bounds = array<i64: 8, 64>}]} {
    %c0 = arith.constant 0 : index
    %c0_0 = arith.constant 0 : index
    %0 = vector.load %arg1[%c0, %c0_0] : memref<8x64xf32, #tpu.memory_space<vmem>>, vector<8x64xf32>
    %c0_1 = arith.constant 0 : index
    %c0_2 = arith.constant 0 : index
    %1 = vector.load %arg2[%c0_1, %c0_2] : memref<8x1xi32, #tpu.memory_space<vmem>>, vector<8x1xi32>
    %c255_i32 = arith.constant 255 : i32
    %2 = vector.broadcast %c255_i32 : i32 to vector<8x1xi32>
    %3 = arith.andi %1, %2 : vector<8x1xi32>
    %c8_i32 = arith.constant 8 : i32
    %4 = vector.broadcast %c8_i32 : i32 to vector<8x1xi32>
    %5 = arith.shrsi %1, %4 : vector<8x1xi32>
    %c15_i32 = arith.constant 15 : i32
    %6 = vector.broadcast %c15_i32 : i32 to vector<8x1xi32>
    %7 = arith.andi %5, %6 : vector<8x1xi32>
    %c12_i32 = arith.constant 12 : i32
    %8 = vector.broadcast %c12_i32 : i32 to vector<8x1xi32>
    %9 = arith.shrsi %1, %8 : vector<8x1xi32>
    %c15_i32_3 = arith.constant 15 : i32
    %10 = vector.broadcast %c15_i32_3 : i32 to vector<8x1xi32>
    %11 = arith.andi %9, %10 : vector<8x1xi32>
    %12 = tpu.iota {dimensions = array<i32: 1>} : vector<8x320xi32>
    %13 = vector.broadcast %3 : vector<8x1xi32> to vector<8x320xi32>
    %14 = arith.cmpi eq, %12, %13 : vector<8x320xi32>
    %c256_i32 = arith.constant 256 : i32
    %15 = vector.broadcast %c256_i32 : i32 to vector<8x1xi32>
    %16 = arith.addi %7, %15 : vector<8x1xi32>
    %17 = vector.broadcast %16 : vector<8x1xi32> to vector<8x320xi32>
    %18 = arith.cmpi eq, %12, %17 : vector<8x320xi32>
    %19 = arith.ori %14, %18 : vector<8x320xi1>
    %c264_i32 = arith.constant 264 : i32
    %20 = vector.broadcast %c264_i32 : i32 to vector<8x1xi32>
    %21 = arith.addi %11, %20 : vector<8x1xi32>
    %22 = vector.broadcast %21 : vector<8x1xi32> to vector<8x320xi32>
    %23 = arith.cmpi eq, %12, %22 : vector<8x320xi32>
    %24 = arith.ori %19, %23 : vector<8x320xi1>
    %25 = arith.extui %24 : vector<8x320xi1> to vector<8x320xi32>
    %26 = arith.sitofp %25 : vector<8x320xi32> to vector<8x320xf32>
    %27 = arith.truncf %26 : vector<8x320xf32> to vector<8x320xbf16>
    %28 = arith.truncf %0 : vector<8x64xf32> to vector<8x64xbf16>
    %29 = tpu.concatenate %28, %27 in 1 : vector<8x64xbf16>, vector<8x320xbf16> -> vector<8x384xbf16>
    %c0_4 = arith.constant 0 : index
    %c0_5 = arith.constant 0 : index
    %30 = vector.load %arg3[%c0_4, %c0_5] : memref<384x128xbf16, #tpu.memory_space<vmem>>, vector<384x128xbf16>
    %cst = arith.constant dense<0.000000e+00> : vector<8x128xf32>
    %31 = tpu.matmul %29, %30, %cst {dimension_numbers = #tpu.dot_dimension_numbers<[1], [0], [0], [1], [0, 0, 1, 1], [], []>} : vector<8x384xbf16>, vector<384x128xbf16>, vector<8x128xf32> -> vector<8x128xf32>
    %c0_6 = arith.constant 0 : index
    %c0_7 = arith.constant 0 : index
    %32 = vector.load %arg4[%c0_6, %c0_7] : memref<1x128xf32, #tpu.memory_space<vmem>>, vector<1x128xf32>
    %33 = vector.broadcast %32 : vector<1x128xf32> to vector<8x128xf32>
    %34 = arith.addf %31, %33 : vector<8x128xf32>
    %cst_8 = arith.constant 0.000000e+00 : f32
    %35 = vector.broadcast %cst_8 : f32 to vector<8x128xf32>
    %36 = arith.maximumf %34, %35 : vector<8x128xf32>
    %37 = arith.truncf %36 : vector<8x128xf32> to vector<8x128xbf16>
    %c0_9 = arith.constant 0 : index
    %c0_10 = arith.constant 0 : index
    %38 = vector.load %arg5[%c0_9, %c0_10] : memref<128x128xbf16, #tpu.memory_space<vmem>>, vector<128x128xbf16>
    %cst_11 = arith.constant dense<0.000000e+00> : vector<8x128xf32>
    %39 = tpu.matmul %37, %38, %cst_11 {dimension_numbers = #tpu.dot_dimension_numbers<[1], [0], [0], [1], [0, 0, 1, 1], [], []>} : vector<8x128xbf16>, vector<128x128xbf16>, vector<8x128xf32> -> vector<8x128xf32>
    %c0_12 = arith.constant 0 : index
    %c0_13 = arith.constant 0 : index
    %40 = vector.load %arg6[%c0_12, %c0_13] : memref<1x128xf32, #tpu.memory_space<vmem>>, vector<1x128xf32>
    %41 = vector.broadcast %40 : vector<1x128xf32> to vector<8x128xf32>
    %42 = arith.addf %39, %41 : vector<8x128xf32>
    %cst_14 = arith.constant 0.000000e+00 : f32
    %43 = vector.broadcast %cst_14 : f32 to vector<8x128xf32>
    %44 = arith.maximumf %42, %43 : vector<8x128xf32>
    %45 = arith.truncf %44 : vector<8x128xf32> to vector<8x128xbf16>
    %c0_15 = arith.constant 0 : index
    %c0_16 = arith.constant 0 : index
    %46 = vector.load %arg7[%c0_15, %c0_16] : memref<128x64xbf16, #tpu.memory_space<vmem>>, vector<128x64xbf16>
    %cst_17 = arith.constant dense<0.000000e+00> : vector<8x64xf32>
    %47 = tpu.matmul %45, %46, %cst_17 {dimension_numbers = #tpu.dot_dimension_numbers<[1], [0], [0], [1], [0, 0, 1, 1], [], []>} : vector<8x128xbf16>, vector<128x64xbf16>, vector<8x64xf32> -> vector<8x64xf32>
    %c0_18 = arith.constant 0 : index
    %c0_19 = arith.constant 0 : index
    %48 = vector.load %arg8[%c0_18, %c0_19] : memref<1x64xf32, #tpu.memory_space<vmem>>, vector<1x64xf32>
    %49 = vector.broadcast %48 : vector<1x64xf32> to vector<8x64xf32>
    %50 = arith.addf %47, %49 : vector<8x64xf32>
    %51 = arith.addf %50, %0 : vector<8x64xf32>
    %c0_20 = arith.constant 0 : index
    %c0_21 = arith.constant 0 : index
    %52 = vector.load %arg9[%c0_20, %c0_21] : memref<8x64xf32, #tpu.memory_space<vmem>>, vector<8x64xf32>
    tpu.vector_store %arg9[%c0_20, %c0_21], %51 {strides = array<i32>} : memref<8x64xf32, #tpu.memory_space<vmem>>, vector<8x64xf32>,
    return
  }
  func.func @transform_0(%arg0: i32) -> (i32, i32) {
    %c0_i32 = arith.constant 0 : i32
    %c0_i32_0 = arith.constant 0 : i32
    return %arg0, %c0_i32 : i32, i32
  }
  func.func @transform_1(%arg0: i32) -> (i32, i32) {
    %c0_i32 = arith.constant 0 : i32
    %c0_i32_0 = arith.constant 0 : i32
    return %arg0, %c0_i32 : i32, i32
  }
  func.func @transform_2(%arg0: i32) -> (i32, i32) {
    %c0_i32 = arith.constant 0 : i32
    %c0_i32_0 = arith.constant 0 : i32
    %c0_i32_1 = arith.constant 0 : i32
    return %c0_i32, %c0_i32_0 : i32, i32
  }
  func.func @transform_3(%arg0: i32) -> (i32, i32) {
    %c0_i32 = arith.constant 0 : i32
    %c0_i32_0 = arith.constant 0 : i32
    %c0_i32_1 = arith.constant 0 : i32
    return %c0_i32, %c0_i32_0 : i32, i32
  }
  func.func @transform_4(%arg0: i32) -> (i32, i32) {
    %c0_i32 = arith.constant 0 : i32
    %c0_i32_0 = arith.constant 0 : i32
    %c0_i32_1 = arith.constant 0 : i32
    return %c0_i32, %c0_i32_0 : i32, i32
  }
  func.func @transform_5(%arg0: i32) -> (i32, i32) {
    %c0_i32 = arith.constant 0 : i32
    %c0_i32_0 = arith.constant 0 : i32
    %c0_i32_1 = arith.constant 0 : i32
    return %c0_i32, %c0_i32_0 : i32, i32
  }
  func.func @transform_6(%arg0: i32) -> (i32, i32) {
    %c0_i32 = arith.constant 0 : i32
    %c0_i32_0 = arith.constant 0 : i32
    %c0_i32_1 = arith.constant 0 : i32
    return %c0_i32, %c0_i32_0 : i32, i32
  }
  func.func @transform_7(%arg0: i32) -> (i32, i32) {
    %c0_i32 = arith.constant 0 : i32
    %c0_i32_0 = arith.constant 0 : i32
    %c0_i32_1 = arith.constant 0 : i32
    return %c0_i32, %c0_i32_0 : i32, i32
  }
  func.func @transform_8(%arg0: i32) -> (i32, i32) {
    %c0_i32 = arith.constant 0 : i32
    %c0_i32_0 = arith.constant 0 : i32
    return %arg0, %c0_i32 : i32, i32
  }
}

</mosaic_0001>

<bundles_post_ra>
// kernel: value_network_forward.1
= control target key start
LH: loop header
LB: loop body
LE: loop exit
PB: predicated region body
PF: predicated region fallthrough
CT: control target
= control target key end

     0   :  { %v844_v1 = vmov 0   ;;  %v845_v9 = vmov 0.0   ;;  %s1083_s0 = inlined_call_operand.vmem [shape: f32[8,64], index: 0, kind: input, shape index: {}]   ;;  %s1084_s1 = inlined_call_operand.vmem [shape: s32[8,1], index: 1, kind: input, shape index: {}]   ;;  %s1085_s2 = inlined_call_operand.vmem [shape: bf16[384,128], index: 2, kind: input, shape index: {}]   ;;  %s1086_s3 = inlined_call_operand.vmem [shape: f32[1,128], index: 3, kind: input, shape index: {}]   ;;  %s1087_s4 = inlined_call_operand.vmem [shape: bf16[128,128], index: 4, kind: input, shape index: {}]   ;;  %s1088_s5 = inlined_call_operand.vmem [shape: f32[1,128], index: 5, kind: input, shape index: {}]   ;;  %s1089_s6 = inlined_call_operand.vmem [shape: bf16[128,64], index: 6, kind: input, shape index: {}]   ;;  %s1090_s7 = inlined_call_operand.vmem [shape: f32[1,64], index: 7, kind: input, shape index: {}]   ;;  %s1091_s8 = inlined_call_operand.hbm [shape: f32[8,64], index: 8, kind: output, shape index: {}]  }
   0x1   :  { %v32_v0 = vld [vmem:[%s1084_s1] sm:$0xff]  ;;  %778 = vset.pattern.permute.xlu0 %v844_v1  ;;  %779 = vset.pattern.permute.xlu1 %v844_v1  ;;  %v782_v12 = vld [vmem:[%s1085_s2 + $0x48] sm:$0xff]   ;;  %v785_v16 = vld [vmem:[%s1085_s2 + $0x50] sm:$0xff]  }
   0x2   :  { %v33_v2 = vand.u32 255, %v32_v0  ;;  %v34_v3 = vshra.s32 %v32_v0, 8  ;;  %v36_v4 = vshra.s32 %v32_v0, 12  ;;  %713 = vmatprep.subr.bf16.mxu1 %v845_v9  ;;  %v780_v10 = vld [vmem:[%s1085_s2 + $0x40] sm:$0xff]   ;;  %v784_v14 = vld [vmem:[%s1085_s2 + $0x8] sm:$0xff]   ;;  %v787_v17 = vld [vmem:[%s1085_s2 + $0x10] sm:$0xff]  }
   0x3   :  { %v781_v11 = vld [vmem:[%s1085_s2] sm:$0xff]   ;;  %664 = vmatprep.subr.bf16.mxu0 %v780_v10  ;;  %v786_v15 = vld [vmem:[%s1085_s2 + $0x88] sm:$0xff]   ;;  %v788_v18 = vld [vmem:[%s1085_s2 + $0x58] sm:$0xff]  }
   0x4   :  { %43 = vperm.xlu0 %778, %v33_v2   ;;  %v35_v5 = vand.u32 15, %v34_v3  ;;  %v37_v6 = vand.u32 15, %v36_v4  ;;  %v783_v13 = vld [vmem:[%s1085_s2 + $0x80] sm:$0xff]   ;;  %665 = vmatpush3.bf16.msra.mxu0 %v781_v11  ;;  %v789_v19 = vld [vmem:[%s1085_s2 + $0x90] sm:$0xff]   ;;  %v790_v20 = vld [vmem:[%s1085_s2 + $0x18] sm:$0xff]  }
   0x5   :  { %714 = vmatpush3.bf16.msra.mxu1 %v783_v13  ;;  %666 = vmatprep.subr.bf16.mxu0 %v782_v12  ;;  %v792_v21 = vld [vmem:[%s1085_s2 + $0x98] sm:$0xff]   ;;  %v791_v22 = vld [vmem:[%s1085_s2 + $0x60] sm:$0xff]   ;;  %v794_v25 = vld [vmem:[%s1085_s2 + $0x68] sm:$0xff]  }
   0x6   :  { %v48_v7 = vadd.s32 256, %v35_v5  ;;  %v58_v8 = vadd.s32 264, %v37_v6  ;;  %715 = vmatprep.subr.bf16.mxu1 %v845_v9  ;;  %v793_v23 = vld [vmem:[%s1085_s2 + $0x20] sm:$0xff]  }
   0x7   :  { %v795_v24 = vld [vmem:[%s1085_s2 + $0xa0] sm:$0xff]  }
   0x8   :  { %50 = vperm.xlu0 %778, %v48_v7   ;;  %60 = vperm.xlu1 %779, %v58_v8  }
   0x9   :  { %667 = vmatpush3.bf16.msra.mxu0 %v784_v14  ;;  %716 = vmatpush3.bf16.msra.mxu1 %v786_v15 }
   0xa   :  { %668 = vmatprep.subr.bf16.mxu0 %v785_v16  ;;  %717 = vmatprep.subr.bf16.mxu1 %v845_v9 }
   0xd   :  { %669 = vmatpush3.bf16.msra.mxu0 %v787_v17  ;;  %718 = vmatpush3.bf16.msra.mxu1 %v789_v19 }
   0xe   :  { %670 = vmatprep.subr.bf16.mxu0 %v788_v18  ;;  %719 = vmatprep.subr.bf16.mxu1 %v845_v9 }
  0x11   :  { %671 = vmatpush3.bf16.msra.mxu0 %v790_v20  ;;  %720 = vmatpush3.bf16.msra.mxu1 %v792_v21 }
  0x12   :  { %672 = vmatprep.subr.bf16.mxu0 %v791_v22  ;;  %721 = vmatprep.subr.bf16.mxu1 %v845_v9 }
  0x13   :  { %13 = vsyncpa [#allocation3], 0  ;;  %v796_v26 = vld [vmem:[%s1085_s2 + $0x28] sm:$0xff]   ;;  %v797_v28 = vld [vmem:[%s1085_s2 + $0x70] sm:$0xff]   ;;  %v38_v33 = vlaneseq  ;;  %vm846_vm0 = vmmov 0   ;;  %s848_s20 = smov [#allocation2]  }
  0x14   :  { %v798_v27 = vld [vmem:[%s1085_s2 + $0xa8] sm:$0xff]   ;;  %v799_v29 = vld [vmem:[%s1085_s2 + $0x30] sm:$0xff]   ;;  %v800_v31 = vld [vmem:[%s1085_s2 + $0x78] sm:$0xff]   ;;  %729 = vmatprep.mubr.msk.bf16.mxu1 %vm846_vm0, %v845_v9 }
  0x15   :  { %673 = vmatpush3.bf16.msra.mxu0 %v793_v23  ;;  %722 = vmatpush3.bf16.msra.mxu1 %v795_v24  ;;  %v801_v30 = vld [vmem:[%s1085_s2 + $0xb0] sm:$0xff]   ;;  %v802_v32 = vld [vmem:[%s1085_s2 + $0x38] sm:$0xff]   ;;  %v39_v34 = vand.u32 127, %v38_v33  ;;  %v987_v47 = vld [vmem:[%s1083_s0] sm:$0xff] }
  0x16   :  { %674 = vmatprep.subr.bf16.mxu0 %v794_v25  ;;  %723 = vmatprep.subr.bf16.mxu1 %v845_v9  ;;  %v803_v37 = vld [vmem:[%s1085_s2 + $0xb8] sm:$0xff]   ;;  %s847_s2 = smov 64   ;;  %v77_v48 = vpack.c.bf16 %v987_v47, %v987_v47  ;;  %v804_v52 = vld [vmem:[%s1087_s4] sm:$0xff]   ;;  %v805_v56 = vld [vmem:[%s1087_s4 + $0x8] sm:$0xff]  }
  0x17   :  { %v40_v36 = vadd.s32 128, %v39_v34  ;;  %v41_v38 = vadd.s32 256, %v39_v34  ;;  %v806_v57 = vld [vmem:[%s1087_s4 + $0x10] sm:$0xff]   ;;  %v807_v58 = vld [vmem:[%s1087_s4 + $0x18] sm:$0xff]   ;;  %v808_v59 = vld [vmem:[%s1087_s4 + $0x20] sm:$0xff]  }
  0x18   :  { %v809_v60 = vld [vmem:[%s1087_s4 + $0x28] sm:$0xff]   ;;  %v810_v61 = vld [vmem:[%s1087_s4 + $0x30] sm:$0xff]   ;;  %v811_v62 = vld [vmem:[%s1087_s4 + $0x38] sm:$0xff]  }
  0x19   :  { %675 = vmatpush3.bf16.msra.mxu0 %v796_v26  ;;  %724 = vmatpush3.bf16.msra.mxu1 %v798_v27  ;;  %v812_v63 = vld [vmem:[%s1089_s6] sm:$0xff]   ;;  %v813_v0 = vld [vmem:[%s1089_s6 + $0x8] sm:$0xff]   ;;  %v814_v1 = vld [vmem:[%s1089_s6 + $0x10] sm:$0xff]  }
  0x1a   :  { %676 = vmatprep.subr.bf16.mxu0 %v797_v28  ;;  %725 = vmatprep.subr.bf16.mxu1 %v845_v9  ;;  %v815_v2 = vld [vmem:[%s1089_s6 + $0x18] sm:$0xff]   ;;  %v816_v3 = vld [vmem:[%s1089_s6 + $0x20] sm:$0xff]   ;;  %v817_v4 = vld [vmem:[%s1089_s6 + $0x28] sm:$0xff]  }
  0x1b   :  { %v621_v7 = vld [vmem:[%s1086_s3] ss:$0 sm:$0xff]  ;;  %v818_v20 = vld [vmem:[%s1089_s6 + $0x30] sm:$0xff]   ;;  %v819_v21 = vld [vmem:[%s1089_s6 + $0x38] sm:$0xff]   ;;  %s610_s6 = sshll.u32 %s848_s20, 4  ;;  %s611_s6 = int_to_ptr.vmem [resolvable:$true] %s610_s6 }
  0x1c   :  { %v646_v22 = vld [vmem:[%s1088_s5] ss:$0 sm:$0xff]  ;;  %s820_s5 = scalar_lea.vmem %s611_s6, 128  ;;  %p825_p1 = scmp.lt.s32.totalorder %s611_s6, %s611_s6 }
  0x1d   :  { %677 = vmatpush3.bf16.msra.mxu0 %v799_v29  ;;  %726 = vmatpush3.bf16.msra.mxu1 %v801_v30  ;;  %p821_p0 = scmp.ne.s32.totalorder %s611_s6, %s820_s5  ;;  %p826_p2 = scmp.lt.s32.totalorder %s820_s5, %s820_s5 }
  0x1e   :  { %678 = vmatprep.subr.bf16.mxu0 %v800_v31  ;;  %727 = vmatprep.subr.bf16.mxu1 %v845_v9 }
  0x1f   :  { %p827_p3 = por %p826_p2, %p825_p1 }
  0x21   :  { %679 = vmatpush3.bf16.msra.mxu0 %v802_v32  ;;  %728 = vmatpush3.bf16.msra.mxu1 %v803_v37  ;;  %p828_p4 = pnand %p827_p3, %p821_p0 }
  0x22   :  { %733 = vmatprep.subr.bf16.mxu0 %v845_v9  ;;  %753 = vmatprep.subr.bf16.mxu1 %v845_v9 }
  0x83   :  { %v44_v35 = vpop.permute.xlu0 %43 }
  0x84   :  { %vm45_vm1 = vcmp.eq.s32.totalorder %v39_v34, %v44_v35  ;;  %vm46_vm5 = vcmp.eq.s32.totalorder %v40_v36, %v44_v35  ;;  %vm47_vm8 = vcmp.eq.s32.totalorder %v41_v38, %v44_v35 }
  0x87   :  { %v51_v39 = vpop.permute.xlu0 %50  ;;  %v61_v40 = vpop.permute.xlu1 %60 }
  0x88   :  { %vm52_vm2 = vcmp.eq.s32.totalorder %v39_v34, %v51_v39  ;;  %vm53_vm3 = vcmp.eq.s32.totalorder %v40_v36, %v51_v39  ;;  %vm54_vm4 = vcmp.eq.s32.totalorder %v41_v38, %v51_v39  ;;  %vm62_vm7 = vcmp.eq.s32.totalorder %v39_v34, %v61_v40 }
  0x89   :  { %vm55_vm6 = vmor %vm45_vm1, %vm52_vm2  ;;  %vm63_vm10 = vcmp.eq.s32.totalorder %v40_v36, %v61_v40  ;;  %vm64_vm12 = vcmp.eq.s32.totalorder %v41_v38, %v61_v40  ;;  %vm87_vm1 = vcmask 523264  }
  0x8a   :  { %vm56_vm9 = vmor %vm46_vm5, %vm53_vm3 }
  0x8b   :  { %vm57_vm11 = vmor %vm47_vm8, %vm54_vm4 }
  0x8c   :  { %vm65_vm13 = vmor %vm55_vm6, %vm62_vm7 }
  0x8d   :  { %vm66_vm14 = vmor %vm56_vm9, %vm63_vm10  ;;  %v618_v41 = vsel %vm65_vm13, 1.0, %v845_v9 }
  0x8e   :  { %vm67_vm15 = vmor %vm57_vm11, %vm64_vm12  ;;  %v619_v42 = vsel %vm66_vm14, 1.0, %v845_v9  ;;  %v74_v43 = vpack.c.bf16 %v618_v41, %v618_v41 }
  0x8f   :  { %v75_v44 = vpack.c.bf16 %v619_v42, %v619_v42  ;;  %v620_v45 = vsel %vm67_vm15, 1.0, %v845_v9 }
  0x90   :  { %81 = vrot.lane.b32.xlu1 %v74_v43, %s847_s2  ;;  %v76_v46 = vpack.c.bf16 %v620_v45, %v620_v45 }
  0x91   :  { %83 = vrot.lane.b32.xlu0 %v75_v44, %s847_s2 }
  0x94   :  { %85 = vrot.lane.b32.xlu1 %v76_v46, %s847_s2 }
 0x102   :  { %v82_v49 = vpop.permute.xlu1 %81 }
 0x103   :  { %v84_v50 = vpop.permute.xlu0 %83  ;;  %v95_v51 = vsel %vm87_vm1, %v77_v48, %v82_v49 }
 0x104   :  { %v88_v53 = vsel %vm87_vm1, %v82_v49, %v84_v50 }
 0x105   :  { %328 = vmatprep.mubr.bf16.mxu0 %v88_v53 }
 0x106   :  { %329 = vmatmul.mubr.bf16.vlgmr.msra.gmra.mrb[0].mxu0 %v95_v51  ;;  %v86_v54 = vpop.permute.xlu1 %85 }
 0x107   :  { %v89_v55 = vsel %vm87_vm1, %v84_v50, %v86_v54  ;;  %734 = vmatpush3.bf16.msra.mxu0 %v804_v52  ;;  %749 = vmatprep.mubr.msk.bf16.mxu0 %vm846_vm0, %v845_v9 }
 0x108   :  { %730 = vmatmul.mubr.bf16.vlgmr.msra.gmra.mrb[0].mxu1 %v89_v55  ;;  %735 = vmatprep.subr.bf16.mxu0 %v845_v9 }
 0x109   :  { %769 = vmatprep.mubr.msk.bf16.mxu1 %vm846_vm0, %v845_v9  ;;  %754 = vmatpush3.bf16.msra.mxu1 %v812_v63 }
 0x10a   :  { %755 = vmatprep.subr.bf16.mxu1 %v845_v9 }
 0x10b   :  { %736 = vmatpush3.bf16.msra.mxu0 %v805_v56 }
 0x10c   :  { %737 = vmatprep.subr.bf16.mxu0 %v845_v9 }
 0x10d   :  { %756 = vmatpush3.bf16.msra.mxu1 %v813_v0 }
 0x10e   :  { %757 = vmatprep.subr.bf16.mxu1 %v845_v9 }
 0x10f   :  { %738 = vmatpush3.bf16.msra.mxu0 %v806_v57 }
 0x110   :  { %739 = vmatprep.subr.bf16.mxu0 %v845_v9 }
 0x111   :  { %758 = vmatpush3.bf16.msra.mxu1 %v814_v1 }
 0x112   :  { %759 = vmatprep.subr.bf16.mxu1 %v845_v9 }
 0x113   :  { %740 = vmatpush3.bf16.msra.mxu0 %v807_v58 }
 0x114   :  { %741 = vmatprep.subr.bf16.mxu0 %v845_v9 }
 0x115   :  { %760 = vmatpush3.bf16.msra.mxu1 %v815_v2 }
 0x116   :  { %761 = vmatprep.subr.bf16.mxu1 %v845_v9 }
 0x117   :  { %742 = vmatpush3.bf16.msra.mxu0 %v808_v59 }
 0x118   :  { %743 = vmatprep.subr.bf16.mxu0 %v845_v9 }
 0x119   :  { %762 = vmatpush3.bf16.msra.mxu1 %v816_v3 }
 0x11a   :  { %763 = vmatprep.subr.bf16.mxu1 %v845_v9 }
 0x11b   :  { %744 = vmatpush3.bf16.msra.mxu0 %v809_v60 }
 0x11c   :  { %745 = vmatprep.subr.bf16.mxu0 %v845_v9 }
 0x11d   :  { %764 = vmatpush3.bf16.msra.mxu1 %v817_v4 }
 0x11e   :  { %765 = vmatprep.subr.bf16.mxu1 %v845_v9 }
 0x11f   :  { %746 = vmatpush3.bf16.msra.mxu0 %v810_v61 }
 0x120   :  { %747 = vmatprep.subr.bf16.mxu0 %v845_v9 }
 0x121   :  { %766 = vmatpush3.bf16.msra.mxu1 %v818_v20 }
 0x122   :  { %767 = vmatprep.subr.bf16.mxu1 %v845_v9  ;;  %v655_v9 = vld [vmem:[%s1090_s7] ss:$0 sm:$0xff] }
 0x123   :  { %748 = vmatpush3.bf16.msra.mxu0 %v811_v62 }
 0x125   :  { %768 = vmatpush3.bf16.msra.mxu1 %v819_v21 }
 0x1d9   :  { %v680_v5 = vpop.f32.mrb[0].mxu0 }
 0x1da   :  { %v681_v6 = vpop.f32.mrb[1].mxu0 }
 0x1db   :  { %v682_v8 = vadd.f32 %v681_v6, %v680_v5  ;;  %v683_v10 = vpop.f32.mrb[2].mxu0  ;;  %v370_v11 = vpop.f32.mrb[0].mxu1 }
 0x1dc   :  { %v684_v12 = vpop.f32.mrb[3].mxu0  ;;  %v731_v13 = vpop.f32.mrb[1].mxu1 }
 0x1dd   :  { %v331_v14 = vadd.f32 %v682_v8, %v621_v7  ;;  %v373_v15 = vpop.f32.mrb[2].mxu1 }
 0x1de   :  { %v732_v16 = vpop.f32.mrb[3].mxu1 }
 0x1df   :  { %v371_v17 = vadd.f32 %v370_v11, %v331_v14 }
 0x1e1   :  { %v376_v18 = vmax.f32 %v371_v17, 0.0 }
 0x1e3   :  { %v377_v19 = vpack.c.bf16 %v376_v18, %v376_v18 }
 0x1e5   :  { %750 = vmatmul.mubr.bf16.vlgmr.msra.gmra.mrb[4].mxu0 %v377_v19 }
 0x2b8   :  { %v483_v23 = vpop.f32.mrb[4].mxu0 }
 0x2b9   :  { %v484_v24 = vadd.f32 %v646_v22, %v483_v23  ;;  %v751_v25 = vpop.f32.mrb[5].mxu0 }
 0x2ba   :  { %v486_v26 = vpop.f32.mrb[6].mxu0 }
 0x2bb   :  { %v489_v27 = vmax.f32 %v484_v24, 0.0  ;;  %v752_v28 = vpop.f32.mrb[7].mxu0 }
 0x2bd   :  { %v490_v29 = vpack.c.bf16 %v489_v27, %v489_v27 }
 0x2bf   :  { %770 = vmatmul.mubr.bf16.vlgmr.msra.gmra.mrb[4].mxu1 %v490_v29 }
 0x392   :  { %v596_v30 = vpop.f32.mrb[4].mxu1 }
 0x393   :  { %v597_v31 = vadd.f32 %v655_v9, %v596_v30  ;;  %v771_v32 = vpop.f32.mrb[5].mxu1 }
 0x394   :  { %v599_v33 = vpop.f32.mrb[6].mxu1 }
 0x395   :  { %v602_v34 = vadd.f32 %v597_v31, %v987_v47  ;;  %v772_v35 = vpop.f32.mrb[7].mxu1 }
 0x397   :  { %603 = vst.msk [vmem:[#allocation2] sm:$0xff] %vm87_vm1, %v602_v34 }
 0x398   :  { %831 = shalt.err (!%p828_p4)
}
 0x399   :  { %s832_s22 = scalar_lea.hbm %s1091_s8, 128 }
 0x39a   :  { %p833_p5 = scmp.ne.s32.totalorder %s1091_s8, %s832_s22  ;;  %p836_p6 = scmp.lt.u32.totalorder %s832_s22, %s1091_s8 }
 0x39c   :  { %p838_p7 = pnand %p836_p6, %p833_p5 }
 0x39e   :  { %841 = shalt.err (!%p838_p7)
}
 0x39f   :  { %613 = dma.vmem_to_hbm [thread:$0]  %s611_s6, 128, %s1091_s8, [#allocation3]  }
 0x3a0   :  { %842 = dma.done.wait [#allocation3], 128  }
 0x3a1   :  { %843 = vsyncadd [#allocation3], 4294967168 }
 0x3a2   :  { %617 = vsyncpa [#allocation3], 1 }

</bundles_post_ra>
